<compile_context>
chip_gen: v7x
topology: tpu7x:2x2x1
jax: 0.10.0
libtpu: 0.0.40
codegen_flags: <defaults>
</compile_context>

<pallas_src>
import functools
import itertools

import jax
import jax.numpy as jnp
import numpy as np
from jax.experimental import pallas as pl
from jax.experimental.pallas import tpu as pltpu

_SUBLANE = 16                 # bf16 packs 16 rows / vreg
_LANE = 128
_MiB = 1024 * 1024


# ----------------------------------------------------------------------------
# Small helpers
# ----------------------------------------------------------------------------
def _cdiv(a, b):
    return -(-a // b)


def _round_up(a, b):
    return _cdiv(a, b) * b


def _split_dim(n, max_tile, align):
    """Split n into `num` tiles of size `tile` (multiple of `align`,
    <= max_tile rounded to `align`) with minimal padding."""
    max_tile = max(align, (max_tile // align) * align)
    num = _cdiv(n, max_tile)
    tile = _round_up(_cdiv(n, num), align)
    return tile, num, tile * num


_TPU_VMEM_CAPACITY = None


def _tpu_vmem_capacity():
    """Physical VMEM per core in bytes; conservative 64 MiB fallback."""
    global _TPU_VMEM_CAPACITY
    if _TPU_VMEM_CAPACITY is None:
        try:
            _TPU_VMEM_CAPACITY = int(pltpu.get_tpu_info().vmem_capacity_bytes)
        except Exception:
            _TPU_VMEM_CAPACITY = 64 * _MiB   # safe on every generation
    return _TPU_VMEM_CAPACITY


# ----------------------------------------------------------------------------
# Pallas kernels
# ----------------------------------------------------------------------------
def _finalize(inter, s2_col, ones_col):
    """inter: [tq, Tp] f32 accumulator; s2_col: [Tp, 1] f32 row-sums of m2.

    Column `ones_col` of `inter` holds s1 (row-sums of m1) because m2 carries
    an all-ones row at that index -- the MXU computed it for free.
    """
    s1 = inter[:, ones_col:ones_col + 1]          # [tq, 1]
    union = s1 + s2_col.T - inter                 # [tq, Tp]
    return inter / (union + 1e-8)


def _soft_iou_kernel(m1_ref, m2_ref, out_ref, s2_acc, *, ones_col):
    """Multi-step reduction over H*W.  out_ref's block index is constant along
    the k axis, so it is resident in VMEM and used directly as the f32
    intersection accumulator (no inter_acc scratch)."""
    k = pl.program_id(1)

    @pl.when(k == 0)
    def _():
        out_ref[...] = jnp.zeros_like(out_ref)
        s2_acc[...] = jnp.zeros_like(s2_acc)

    m1 = m1_ref[...]                              # [tq, tk] bf16
    m2 = m2_ref[...]                              # [Tp, tk] bf16

    # Contract over the lane (H*W) axis of both operands -- no transposed
    # [Tp, tk] tile is materialized per step (verified pattern; see flash-attn
    # q@k^T style contraction).
    out_ref[...] += jax.lax.dot_general(
        m1, m2,
        dimension_numbers=(((1,), (1,)), ((), ())),
        preferred_element_type=jnp.float32,
    )

    # m2 row-sums: tiny (Tp <= ~32 rows), f32 accumulation.
    s2_acc[...] += jnp.sum(m2.astype(jnp.float32), axis=-1, keepdims=True)

    @pl.when(k == pl.num_programs(1) - 1)
    def _():
        out_ref[...] = _finalize(out_ref[...], s2_acc[...], ones_col)


def _soft_iou_kernel_single(m1_ref, m2_ref, out_ref, *, ones_col):
    """nk == 1 fast path: no scratch, no init/finalize branches."""
    m1 = m1_ref[...]
    m2 = m2_ref[...]
    inter = jax.lax.dot_general(
        m1, m2,
        dimension_numbers=(((1,), (1,)), ((), ())),
        preferred_element_type=jnp.float32,
    )
    s2 = jnp.sum(m2.astype(jnp.float32), axis=-1, keepdims=True)
    out_ref[...] = _finalize(inter, s2, ones_col)


# ----------------------------------------------------------------------------
# Jitted wrapper (cast + pad + pallas_call fuse into one dispatch)
# ----------------------------------------------------------------------------
@functools.partial(jax.jit, static_argnames=("compute_dtype", "max_tq", "max_tk"))
def _soft_iou_device(mask1, mask2, *, compute_dtype, max_tq, max_tk):
    Q = mask1.shape[0]
    T = mask2.shape[0]
    m1 = mask1.reshape(Q, -1).astype(compute_dtype)
    m2 = mask2.reshape(T, -1).astype(compute_dtype)
    HW = m1.shape[1]
    in_bytes = jnp.dtype(compute_dtype).itemsize

    # --- generation-aware VMEM budgets ---------------------------------------
    vmem_cap = _tpu_vmem_capacity()
    # ~24 MiB input-tile budget on v7x (64 MiB VMEM), ~56 MiB on v5e/v6e (128 MiB).
    input_budget = max(8 * _MiB, min(56 * _MiB, vmem_cap // 2 - 8 * _MiB))
    # Always leave >= 16 MiB headroom for Mosaic internal scratch (48 MiB cap on v7x).
    vmem_ceiling = max(32 * _MiB, vmem_cap - 16 * _MiB)

    # --- query tiling: >= 2 tiles when Q > one sublane group (dual-TC v7x) ---
    Qp0 = _round_up(Q, _SUBLANE)
    tq_cap = min(max_tq, max(_SUBLANE, _round_up(_cdiv(Qp0, 2), _SUBLANE)))
    tq, nq, Qp = _split_dim(Q, tq_cap, _SUBLANE)

    # --- target dim: reserve one extra row for the all-ones row (s1 via MXU) -
    Tp = _round_up(T + 1, _SUBLANE)
    ones_col = T

    # --- reduction tiling over H*W (HBM-bound: as large as the budget allows)
    per_tk_bytes = (tq + Tp) * 2 * in_bytes + Tp * 4   # 2x-buffered inputs + f32 m2 temp
    tk_cap = max(_LANE, min(max_tk, input_budget // per_tk_bytes))
    tk, nk, HWp = _split_dim(HW, tk_cap, _LANE)

    # --- padding (fused under jit; single HBM pass) ---------------------------
    if Qp == Q and HWp == HW:
        m1p = m1
    else:
        m1p = jnp.pad(m1, ((0, Qp - Q), (0, HWp - HW)))
    m2p = jnp.pad(m2, ((0, Tp - T), (0, HWp - HW)))
    # Ones row -> inter[:, T] = sum_c m1[:, c]  (m1's zero-padded columns add 0).
    m2p = m2p.at[ones_col, :].set(jnp.ones((HWp,), dtype=compute_dtype))

    vmem_need = (
        2 * (tq + Tp) * tk * in_bytes      # double-buffered bf16 input blocks
        + Tp * tk * 4                      # f32 cast temp for the m2 row-sum
        + 2 * tq * Tp * 4                  # f32 output block (accumulator)
        + Tp * 4                           # s2 scratch
    )
    vmem_limit = int(min(vmem_ceiling, max(32 * _MiB, vmem_need + 8 * _MiB)))

    if nk == 1:
        kernel = functools.partial(_soft_iou_kernel_single, ones_col=ones_col)
        grid = (nq,)
        in_specs = [
            pl.BlockSpec((tq, tk), lambda qi: (qi, 0)),
            pl.BlockSpec((Tp, tk), lambda qi: (0, 0)),
        ]
        out_specs = pl.BlockSpec((tq, Tp), lambda qi: (qi, 0))
        scratch_shapes = []
        dim_sem = ("parallel",)
    else:
        kernel = functools.partial(_soft_iou_kernel, ones_col=ones_col)
        grid = (nq, nk)
        in_specs = [
            pl.BlockSpec((tq, tk), lambda qi, k: (qi, k)),
            pl.BlockSpec((Tp, tk), lambda qi, k: (0, k)),
        ]
        out_specs = pl.BlockSpec((tq, Tp), lambda qi, k: (qi, 0))
        scratch_shapes = [pltpu.VMEM((Tp, 1), jnp.float32)]
        dim_sem = ("parallel", "arbitrary")

    out = pl.pallas_call(
        kernel,
        out_shape=jax.ShapeDtypeStruct((Qp, Tp), jnp.float32),
        grid_spec=pltpu.PrefetchScalarGridSpec(
            num_scalar_prefetch=0,
            grid=grid,
            in_specs=in_specs,
            out_specs=out_specs,
            scratch_shapes=scratch_shapes,
        ),
        compiler_params=pltpu.CompilerParams(
            dimension_semantics=dim_sem,
            vmem_limit_bytes=vmem_limit,
        ),
    )(m1p, m2p)
    return out[:Q, :T]


def soft_iou_pallas(mask1, mask2, *, compute_dtype=jnp.bfloat16,
                    max_tq=256, max_tk=8192):
    """mask1: [Q, H, W], mask2: [T, H, W]  ->  [Q, T] soft-IoU matrix (f32)."""
    Q, T = mask1.shape[0], mask2.shape[0]
    if Q == 0 or T == 0:
        return jnp.zeros((Q, T), dtype=jnp.float32)
    return _soft_iou_device(mask1, mask2, compute_dtype=compute_dtype,
                            max_tq=max_tq, max_tk=max_tk)


# ----------------------------------------------------------------------------
# Host-side assignment (no Pallas equivalent -- sequential, combinatorial)
# ----------------------------------------------------------------------------
try:
    from scipy.optimize import linear_sum_assignment as _scipy_lsa

    def _linear_sum_assignment_maximize(C):
        return _scipy_lsa(np.asarray(C, dtype=np.float64), maximize=True)
except ImportError:  # pragma: no cover
    # TODO(synk): Hungarian assignment has no clean Pallas equivalent; fallback
    # is exact brute force over permutations, valid only for small Q/T.
    def _linear_sum_assignment_maximize(C):
        C = np.asarray(C, dtype=np.float64)
        Q, T = C.shape
        best_i, best_j, best_val = None, None, -np.inf
        if Q <= T:
            rows = np.arange(Q)
            for perm in itertools.permutations(range(T), Q):
                cols = np.array(perm)
                val = C[rows, cols].sum()
                if val > best_val:
                    best_val, best_i, best_j = val, rows.copy(), cols
        else:
            cols = np.arange(T)
            for perm in itertools.permutations(range(Q), T):
                rows = np.array(perm)
                val = C[rows, cols].sum()
                if val > best_val:
                    best_val, best_i, best_j = val, rows, cols.copy()
            order = np.argsort(best_i)
            best_i, best_j = best_i[order], best_j[order]
        return best_i, best_j


# ----------------------------------------------------------------------------
# HungarianMatcher (JAX/Pallas version)
# ----------------------------------------------------------------------------
class HungarianMatcher:
    def __init__(self, cost_class: float = 1, cost_mask: float = 1, num_points: int = 0):
        assert cost_class != 0 or cost_mask != 0, "all costs cant be 0"
        self.cost_class = cost_class
        self.cost_mask = cost_mask
        self.num_points = num_points

    def __call__(self, out_cap, out_mask, tgt_cap, tgt_mask):
        assert out_cap.shape[0] == out_mask.shape[0]
        assert tgt_cap.shape[0] == tgt_mask.shape[0]
        num_queries = out_cap.shape[0]
        num_targets = tgt_mask.shape[0]
        if num_queries == 0 or num_targets == 0:
            return np.zeros((0,), np.int64), np.zeros((0,), np.int64)

        # Hot path: [Q, T] soft-IoU cost matrix -- single fused (jit) dispatch,
        # single host pull-back.
        siou_mat = np.asarray(
            jax.block_until_ready(soft_iou_pallas(out_mask, tgt_mask)))
        C = (self.cost_mask * siou_mat).reshape(num_queries, -1)

        # Host: Hungarian assignment (maximize), as in the torch reference.
        i, j = _linear_sum_assignment_maximize(C)

        # pair_soft_iou(out_mask[i], tgt_mask[j]) == soft_iou(...)[i, j]
        # (up to the 1e-8 denominator epsilon) -> reuse the cost matrix instead
        # of a second kernel launch + device gather + host<->device sync.
        siou = siou_mat[i, j]
        valid_mask = siou > 0.1

        i = np.asarray(i, dtype=np.int64)[valid_mask]
        j = np.asarray(j, dtype=np.int64)[valid_mask]
        return i, j


# ----------------------------------------------------------------------------
# Demo / self-check
# ----------------------------------------------------------------------------
def _soft_iou_ref(mask1, mask2, dtype=jnp.float32):
    """Pure-JAX reference; `dtype` quantizes the inputs (accumulation in f32)."""
    m1 = mask1.reshape(mask1.shape[0], -1).astype(dtype).astype(jnp.float32)
    m2 = mask2.reshape(mask2.shape[0], -1).astype(dtype).astype(jnp.float32)
    inter = jnp.einsum("nc,mc->nm", m1, m2)
    union = m1.sum(-1)[:, None] + m2.sum(-1)[None, :] - inter
    return inter / (union + 1e-8)


if __name__ == "__main__":
    key = jax.random.PRNGKey(0)
    kq, kt, kc1, kc2, kq2, kt2 = jax.random.split(key, 6)

    Q, T, H, W, E = 8, 5, 32, 32, 32
    out_mask = jax.random.uniform(kq, (Q, H, W), dtype=jnp.float32)  # soft masks in [0,1)
    tgt_mask = jax.random.uniform(kt, (T, H, W), dtype=jnp.float32)
    out_cap = jax.random.normal(kc1, (Q, E), dtype=jnp.float32)      # unused by forward
    tgt_cap = jax.random.normal(kc2, (T, E), dtype=jnp.float32)      # unused by forward

    # 1) Single-k fast path: Pallas vs bf16-quantized reference (tight) and
    #    full-f32 reference (loose).
    C_pallas = np.asarray(jax.block_until_ready(soft_iou_pallas(out_mask, tgt_mask)))
    C_ref_bf16 = np.asarray(_soft_iou_ref(out_mask, tgt_mask, dtype=jnp.bfloat16))
    C_ref_f32 = np.asarray(_soft_iou_ref(out_mask, tgt_mask, dtype=jnp.float32))
    assert np.allclose(C_pallas, C_ref_bf16, rtol=2e-3, atol=2e-3)
    assert np.allclose(C_pallas, C_ref_f32, rtol=3e-2, atol=3e-2)

    # 2) Multi-tile path: several query tiles and several K (H*W) grid steps.
    Q2, T2 = 40, 7
    om2 = jax.random.uniform(kq2, (Q2, H, W), dtype=jnp.float32)
    tm2 = jax.random.uniform(kt2, (T2, H, W), dtype=jnp.float32)
    C2 = np.asarray(jax.block_until_ready(
        soft_iou_pallas(om2, tm2, max_tq=16, max_tk=256)))
    C2_ref = np.asarray(_soft_iou_ref(om2, tm2, dtype=jnp.bfloat16))
    assert np.allclose(C2, C2_ref, rtol=2e-3, atol=2e-3)

    # 3) Full matcher forward.
    matcher = HungarianMatcher(cost_class=1, cost_mask=1, num_points=0)
    i, j = matcher(out_cap, out_mask, tgt_cap, tgt_mask)
    assert len(i) == len(j) and len(i) <= min(Q, T)
    assert np.all((0 <= i) & (i < Q)) and np.all((0 <= j) & (j < T))

    print("KERNEL_OK")
</pallas_src>

<mosaic_0001>
module attributes {stable_mosaic.version = 11 : i64} {
  func.func @_soft_iou_kernel_single(%arg0: i32, %arg1: memref<16x1024xbf16, #tpu.memory_space<vmem>>, %arg2: memref<16x1024xbf16, #tpu.memory_space<vmem>>, %arg3: memref<16x16xf32, #tpu.memory_space<vmem>>) attributes {dimension_semantics = [#tpu.dimension_semantics<parallel>], iteration_bounds = array<i64: 1>, scalar_prefetch = 0 : i64, scratch_operands = 0 : i64, tpu.core_type = #tpu.core_type<tc>, window_params = [{transform_indices = @transform_0, window_bounds = array<i64: 16, 1024>}, {pipeline_mode = #tpu.pipeline_mode<synchronous>, transform_indices = @transform_1, window_bounds = array<i64: 16, 1024>}, {transform_indices = @transform_2, window_bounds = array<i64: 16, 16>}]} {
    %c0 = arith.constant 0 : index
    %c0_0 = arith.constant 0 : index
    %0 = vector.load %arg1[%c0, %c0_0] : memref<16x1024xbf16, #tpu.memory_space<vmem>>, vector<16x1024xbf16>
    %c0_1 = arith.constant 0 : index
    %c0_2 = arith.constant 0 : index
    %1 = vector.load %arg2[%c0_1, %c0_2] : memref<16x1024xbf16, #tpu.memory_space<vmem>>, vector<16x1024xbf16>
    %cst = arith.constant dense<0.000000e+00> : vector<16x16xf32>
    %2 = tpu.matmul %0, %1, %cst {dimension_numbers = #tpu.dot_dimension_numbers<[1], [1], [0], [0], [0, 0, 1, 0], [], []>} : vector<16x1024xbf16>, vector<16x1024xbf16>, vector<16x16xf32> -> vector<16x16xf32>
    %3 = arith.extf %1 : vector<16x1024xbf16> to vector<16x1024xf32>
    %cst_3 = arith.constant dense<0.000000e+00> : vector<16xf32>
    %4 = vector.multi_reduction <add>, %3, %cst_3 [1] : vector<16x1024xf32> to vector<16xf32>
    %5 = vector.shape_cast %4 : vector<16xf32> to vector<16x1xf32>
    %6 = vector.extract_strided_slice %2 {offsets = [0, 5], sizes = [16, 1], strides = [1, 1]} : vector<16x16xf32> to vector<16x1xf32>
    %7 = tpu.transpose %5, [1, 0] : vector<16x1xf32> -> vector<1x16xf32>
    %8 = vector.broadcast %6 : vector<16x1xf32> to vector<16x16xf32>
    %9 = vector.broadcast %7 : vector<1x16xf32> to vector<16x16xf32>
    %10 = arith.addf %8, %9 : vector<16x16xf32>
    %11 = arith.subf %10, %2 : vector<16x16xf32>
    %cst_4 = arith.constant 9.99999993E-9 : f32
    %12 = vector.broadcast %cst_4 : f32 to vector<16x16xf32>
    %13 = arith.addf %11, %12 : vector<16x16xf32>
    %14 = arith.divf %2, %13 : vector<16x16xf32>
    %c0_5 = arith.constant 0 : index
    %c0_6 = arith.constant 0 : index
    %15 = vector.load %arg3[%c0_5, %c0_6] : memref<16x16xf32, #tpu.memory_space<vmem>>, vector<16x16xf32>
    tpu.vector_store %arg3[%c0_5, %c0_6], %14 {strides = array<i32>} : memref<16x16xf32, #tpu.memory_space<vmem>>, vector<16x16xf32>,
    return
  }
  func.func @transform_0(%arg0: i32) -> (i32, i32) {
    %c0_i32 = arith.constant 0 : i32
    %c0_i32_0 = arith.constant 0 : i32
    return %arg0, %c0_i32 : i32, i32
  }
  func.func @transform_1(%arg0: i32) -> (i32, i32) {
    %c0_i32 = arith.constant 0 : i32
    %c0_i32_0 = arith.constant 0 : i32
    %c0_i32_1 = arith.constant 0 : i32
    return %c0_i32, %c0_i32_0 : i32, i32
  }
  func.func @transform_2(%arg0: i32) -> (i32, i32) {
    %c0_i32 = arith.constant 0 : i32
    %c0_i32_0 = arith.constant 0 : i32
    return %arg0, %c0_i32 : i32, i32
  }
}

</mosaic_0001>

<bundles_post_ra>
// kernel: _soft_iou_device.1
= control target key start
LH: loop header
LB: loop body
LE: loop exit
PB: predicated region body
PF: predicated region fallthrough
CT: control target
= control target key end

     0   :  { %v403_v62 = vmov 5   ;;  %vm362_vm0 = vcmask 130048   ;;  %s479_s1 = inlined_call_operand.vmem [shape: bf16[16,1024], index: 1, kind: input, shape index: {}]   ;;  %s480_s0 = inlined_call_operand.vmem [shape: bf16[16,1024], index: 0, kind: input, shape index: {}]   ;;  %s481_s2 = inlined_call_operand.vmem [shape: f32[16,16], index: 2, kind: output, shape index: {}]  }
   0x1   :  { %v20_v0 = vld [vmem:[%s479_s1] sm:$0xff]  ;;  %v428_v2 = vld [vmem:[%s479_s1 + $0x10] sm:$0xff]  ;;  %v21_v15 = vld [vmem:[%s479_s1 + $0x8] sm:$0xff]  ;;  %397 = vset.pattern.permute.xlu1 %v403_v62 }
   0x2   :  { %v24_v1 = vld [vmem:[%s479_s1 + $0x20] sm:$0xff]  ;;  %v272_v4 = vunpack.c.l.bf16 %v20_v0  ;;  %v273_v5 = vunpack.c.h.bf16 %v20_v0  ;;  %v26_v7 = vld [vmem:[%s479_s1 + $0x30] sm:$0xff]  ;;  %v25_v18 = vld [vmem:[%s479_s1 + $0x28] sm:$0xff]  ;;  %v274_v27 = vunpack.c.l.bf16 %v21_v15  ;;  %v275_v34 = vunpack.c.h.bf16 %v21_v15 }
   0x3   :  { %v378_v3 = vcombine.high %v20_v0, %v24_v1  ;;  %v280_v6 = vunpack.c.l.bf16 %v24_v1  ;;  %v12_v8 = vld [vmem:[%s480_s0] sm:$0xff]  ;;  %v281_v10 = vunpack.c.h.bf16 %v24_v1  ;;  %v382_v11 = vcombine.high %v428_v2, %v26_v7  ;;  %v14_v13 = vld [vmem:[%s480_s0 + $0x10] sm:$0xff]  ;;  %v23_v19 = vld [vmem:[%s479_s1 + $0x18] sm:$0xff] }
   0x4   :  { %v16_v9 = vld [vmem:[%s480_s0 + $0x20] sm:$0xff]  ;;  %v377_v12 = vcombine.low %v20_v0, %v24_v1  ;;  %v18_v14 = vld [vmem:[%s480_s0 + $0x30] sm:$0xff]  ;;  %v381_v16 = vcombine.low %v428_v2, %v26_v7  ;;  %v27_v20 = vld [vmem:[%s479_s1 + $0x38] sm:$0xff]  ;;  %v288_v21 = vadd.f32 %v273_v5, %v272_v4  ;;  %v380_v24 = vcombine.high %v21_v15, %v25_v18 }
   0x5   :  { %108 = vmatprep.subr.bf16.mxu1 %v378_v3  ;;  %v370_v17 = vcombine.high %v12_v8, %v16_v9  ;;  %v297_v22 = vadd.f32 %v281_v10, %v280_v6  ;;  %190 = vmatprep.subr.bf16.mxu0 %v382_v11  ;;  %v374_v23 = vcombine.high %v14_v13, %v18_v14  ;;  %v282_v25 = vunpack.c.l.bf16 %v25_v18  ;;  %v13_v28 = vld [vmem:[%s480_s0 + $0x8] sm:$0xff]  ;;  %v15_v32 = vld [vmem:[%s480_s0 + $0x18] sm:$0xff] }
   0x6   :  { %109 = vmatpush1.bf16.xpose.msra.mxu1 %v377_v12  ;;  %191 = vmatpush1.bf16.xpose.msra.mxu0 %v381_v16  ;;  %v384_v26 = vcombine.high %v23_v19, %v27_v20  ;;  %v17_v29 = vld [vmem:[%s480_s0 + $0x28] sm:$0xff]  ;;  %v369_v30 = vcombine.low %v12_v8, %v16_v9  ;;  %v373_v31 = vcombine.low %v14_v13, %v18_v14  ;;  %v19_v33 = vld [vmem:[%s480_s0 + $0x38] sm:$0xff]  ;;  %v276_v36 = vunpack.c.l.bf16 %v428_v2 }
   0x7   :  { %140 = vmatprep.mubr.bf16.mxu1 %v370_v17  ;;  %222 = vmatprep.mubr.bf16.mxu0 %v374_v23  ;;  %v379_v35 = vcombine.low %v21_v15, %v25_v18  ;;  %v289_v37 = vadd.f32 %v288_v21, %v274_v27  ;;  %v283_v38 = vunpack.c.h.bf16 %v25_v18  ;;  %v284_v39 = vunpack.c.l.bf16 %v26_v7 }
   0x8   :  { %149 = vmatprep.subr.bf16.mxu1 %v380_v24  ;;  %231 = vmatprep.subr.bf16.mxu0 %v384_v26  ;;  %v383_v40 = vcombine.low %v23_v19, %v27_v20  ;;  %v372_v41 = vcombine.high %v13_v28, %v17_v29  ;;  %v298_v42 = vadd.f32 %v297_v22, %v282_v25  ;;  %v277_v44 = vunpack.c.h.bf16 %v428_v2 }
   0x9   :  { %v376_v43 = vcombine.high %v15_v32, %v19_v33  ;;  %v290_v45 = vadd.f32 %v289_v37, %v275_v34  ;;  %v285_v46 = vunpack.c.h.bf16 %v26_v7  ;;  %v278_v48 = vunpack.c.l.bf16 %v23_v19 }
   0xa   :  { %v299_v47 = vadd.f32 %v298_v42, %v283_v38  ;;  %v286_v50 = vunpack.c.l.bf16 %v27_v20  ;;  %v279_v52 = vunpack.c.h.bf16 %v23_v19  ;;  %v287_v56 = vunpack.c.h.bf16 %v27_v20 }
   0xb   :  { %v291_v49 = vadd.f32 %v290_v45, %v276_v36  ;;  %v371_v59 = vcombine.low %v13_v28, %v17_v29  ;;  %v375_v60 = vcombine.low %v15_v32, %v19_v33  ;;  %v348_v11 = vlaneseq }
   0xc   :  { %v300_v51 = vadd.f32 %v299_v47, %v284_v39 }
   0xd   :  { %141 = vmatmul.mubr.bf16.vlgmr.msra.gmra.mrb[0].mxu1 %v369_v30  ;;  %223 = vmatmul.mubr.bf16.vlgmr.msra.gmra.mrb[0].mxu0 %v373_v31  ;;  %v292_v53 = vadd.f32 %v291_v49, %v277_v44  ;;  %v349_v12 = vshrl.u32 %v348_v11, 7 }
   0xe   :  { %150 = vmatpush1.bf16.xpose.msra.mxu1 %v379_v35  ;;  %232 = vmatpush1.bf16.xpose.msra.mxu0 %v383_v40  ;;  %v301_v54 = vadd.f32 %v300_v51, %v285_v46 }
   0xf   :  { %181 = vmatprep.mubr.bf16.mxu1 %v372_v41  ;;  %263 = vmatprep.mubr.bf16.mxu0 %v376_v43  ;;  %v293_v55 = vadd.f32 %v292_v53, %v278_v48  ;;  %v350_v13 = vsub.s32 0, %v349_v12 }
  0x10   :  { %v302_v57 = vadd.f32 %v301_v54, %v286_v50 }
  0x11   :  { %v294_v58 = vadd.f32 %v293_v55, %v279_v52 }
  0x12   :  { %v303_v61 = vadd.f32 %v302_v57, %v287_v56 }
  0x13   :  { %295 = vadd.xlane.f32.xlu0 %v294_v58 }
  0x17   :  { %304 = vadd.xlane.f32.xlu0 %v303_v61 }
  0x19   :  { %182 = vmatmul.mubr.bf16.vlgmr.msra.gmra.mrb[0].mxu1 %v371_v59  ;;  %264 = vmatmul.mubr.bf16.vlgmr.msra.gmra.mrb[0].mxu0 %v375_v60 }
  0xa0   :  { %v296_v63 = vpop.xlane.xlu0 %295 }
  0xa1   :  { %306 = vxpose.xlu0.b32.start [1/2] (short) (narrow) %v296_v63, 8 }
  0xa4   :  { %v305_v0 = vpop.xlane.xlu0 %304 }
  0xa5   :  { %307 = vxpose.xlu0.b32.end [2/2] (short) (narrow) %v305_v0, 8 }
  0xce   :  { %398 = vset.pattern.permute.xlu0 %v403_v62 }
  0xec   :  { %v183_v1 = vpop.f32.mrb[0].mxu1  ;;  %v265_v2 = vpop.f32.mrb[0].mxu0 }
  0xed   :  { %v185_v3 = vpop.f32.mrb[1].mxu1  ;;  %v385_v4 = vadd.f32 %v265_v2, %v183_v1  ;;  %v267_v5 = vpop.f32.mrb[1].mxu0 }
  0xee   :  { %v186_v6 = vpop.f32.mrb[2].mxu1  ;;  %v268_v7 = vpop.f32.mrb[2].mxu0 }
  0xef   :  { %v188_v8 = vpop.f32.mrb[3].mxu1  ;;  %v386_v9 = vadd.f32 %v268_v7, %v186_v6  ;;  %v270_v10 = vpop.f32.mrb[3].mxu0  ;;  %340 = vperm.xlu1 %397, %v385_v4  }
  0xf3   :  { %345 = vperm.xlu1 %397, %v386_v9  }
 0x121   :  { %v322_v14 = vpop.trf.xlu0 }
 0x122   :  { %v351_v15 = vrot.slane %v322_v14, %v350_v13 }
 0x16e   :  { %v341_v16 = vpop.permute.xlu1 %340 }
 0x16f   :  { %v352_v17 = vadd.f32 %v351_v15, %v341_v16 }
 0x171   :  { %v354_v18 = vsub.f32 %v352_v17, %v385_v4 }
 0x172   :  { %v346_v19 = vpop.permute.xlu1 %345 }
 0x173   :  { %v356_v20 = vadd.f32 1e-08, %v354_v18  ;;  %v353_v21 = vadd.f32 %v351_v15, %v346_v19 }
 0x175   :  { %399 = vrcp.f32 %v356_v20  ;;  %v355_v22 = vsub.f32 %v353_v21, %v386_v9 }
 0x177   :  { %v357_v23 = vadd.f32 1e-08, %v355_v22 }
 0x179   :  { %401 = vrcp.f32 %v357_v23 }
 0x17f   :  { %v400_v24 = vpop.eup %399 }
 0x180   :  { %v359_v25 = vmul.f32 %v400_v24, %v385_v4 }
 0x182   :  { %363 = vst.msk [vmem:[%s481_s2] sm:$0xff] %vm362_vm0, %v359_v25 }
 0x183   :  { %v402_v26 = vpop.eup %401 }
 0x184   :  { %v361_v27 = vmul.f32 %v402_v26, %v386_v9 }
 0x186   :  { %364 = vst.msk [vmem:[%s481_s2 + $0x8] sm:$0xff] %vm362_vm0, %v361_v27 }

</bundles_post_ra>
